<compile_context>
chip_gen: v7x
topology: tpu7x:2x2x1
jax: 0.10.0
libtpu: 0.0.40
codegen_flags: <defaults>
</compile_context>

<pallas_src>
import functools

import jax
import jax.numpy as jnp
from jax import lax
from jax.experimental import pallas as pl
from jax.experimental.pallas import tpu as pltpu

_LANES = 128
_SUBLANES = 8


def _round_up(x, m):
    return (x + m - 1) // m * m


def _focal_terms(x, z, gamma, alpha):
    """Elementwise focal-loss math in f32. x = logits, z = targets."""
    e = jnp.exp(-jnp.abs(x))                              # EUP: exp (shared)
    r = 1.0 / (1.0 + e)                                   # EUP: recip/div
    # BCE-with-logits, reduction='none', numerically stable:
    #   max(x,0) - x*z + log(1 + exp(-|x|))
    bce = jnp.maximum(x, 0.0) - x * z + jnp.log1p(e)      # EUP: log
    # sigmoid(x) = 1/(1+e) for x>=0, e/(1+e) for x<0
    p = jnp.where(x >= 0.0, r, e * r)
    p_t = z * p + (1.0 - z) * (1.0 - p)
    alpha_factor = z * alpha + (1.0 - z) * (1.0 - alpha)
    t = 1.0 - p_t
    if gamma == 1.5:                                      # trace-time special-case
        mod = t * jnp.sqrt(t)                             # EUP: sqrt
    elif gamma == 2.0:
        mod = t * t
    elif gamma == 1.0:
        mod = t
    elif gamma == 0.0:
        mod = jnp.ones_like(t)
    else:
        mod = jnp.power(t, gamma)                         # general path (log+exp)
    return bce * alpha_factor * mod


def _focal_sum_kernel(pred_ref, tgt_ref, out_ref, *, gamma, alpha, n_elem,
                      block_rows, needs_mask):
    """Per-block partial sum: (block_rows,128) -> (8,128) per-lane partials."""
    x = pred_ref[...].astype(jnp.float32)
    z = tgt_ref[...].astype(jnp.float32)
    loss = _focal_terms(x, z, gamma, alpha)

    if needs_mask:
        # Validity mask built in-kernel (no third HBM stream): global flat
        # element index per lane vs n_elem; masks padding and ragged blocks.
        i = pl.program_id(0)
        row = lax.broadcasted_iota(jnp.int32, (block_rows, _LANES), 0)
        lane = lax.broadcasted_iota(jnp.int32, (block_rows, _LANES), 1)
        gidx = (i * block_rows + row) * _LANES + lane
        loss = jnp.where(gidx < n_elem, loss, 0.0)

    # (block_rows,128) -> (block_rows//8, 8, 128) aligns exactly with vreg
    # tiling, so the reshape is layout-free and the sum is pure VPU adds.
    out_ref[...] = jnp.sum(
        loss.reshape(block_rows // _SUBLANES, _SUBLANES, _LANES), axis=0)


def _focal_map_kernel(pred_ref, tgt_ref, out_ref, *, gamma, alpha):
    """Elementwise (reduction='none') variant."""
    x = pred_ref[...].astype(jnp.float32)
    z = tgt_ref[...].astype(jnp.float32)
    out_ref[...] = _focal_terms(x, z, gamma, alpha).astype(out_ref.dtype)


def focal_loss(pred, logit, gamma=1.5, alpha=0.25, reduction="mean",
               block_rows=4096):
    """FocalLoss(BCEWithLogitsLoss) forward. pred/logit: same (any) shape."""
    assert pred.shape == logit.shape
    orig_shape = pred.shape
    n_elem = pred.size

    if logit.dtype == jnp.bool_:
        logit = logit.astype(pred.dtype)

    # Flatten to a lane-dense (rows, 128) view.  Pad at most 127 elements so
    # the reshape is exact; block-level raggedness is handled in-kernel.
    rows = pl.cdiv(n_elem, _LANES)
    flat_pred = pred.reshape(-1)
    flat_tgt = logit.reshape(-1)
    pad = rows * _LANES - n_elem
    if pad:
        flat_pred = jnp.pad(flat_pred, (0, pad))
        flat_tgt = jnp.pad(flat_tgt, (0, pad))
    pred2d = flat_pred.reshape(rows, _LANES)
    tgt2d = flat_tgt.reshape(rows, _LANES)

    # Clamp tile height for small inputs; keep it a multiple of 8 sublanes.
    block_rows = max(_SUBLANES, min(block_rows, _round_up(rows, _SUBLANES)))
    grid = pl.cdiv(rows, block_rows)

    in_blk = pl.BlockSpec((block_rows, _LANES), lambda i: (i, 0))
    cparams = pltpu.CompilerParams(dimension_semantics=("parallel",))

    if reduction == "none":
        kernel = functools.partial(_focal_map_kernel, gamma=float(gamma),
                                   alpha=float(alpha))
        loss2d = pl.pallas_call(
            kernel,
            out_shape=jax.ShapeDtypeStruct((rows, _LANES), pred.dtype),
            grid=(grid,),
            in_specs=[in_blk, in_blk],
            out_specs=in_blk,
            compiler_params=cparams,
        )(pred2d, tgt2d)
        # Padded tail (if any) is discarded here.
        return loss2d.reshape(-1)[:n_elem].reshape(orig_shape)

    # Mask only needed when there is tail padding or a ragged last block.
    needs_mask = (pad != 0) or (rows % block_rows != 0)
    kernel = functools.partial(_focal_sum_kernel, gamma=float(gamma),
                               alpha=float(alpha), n_elem=n_elem,
                               block_rows=block_rows, needs_mask=needs_mask)
    partials = pl.pallas_call(
        kernel,
        out_shape=jax.ShapeDtypeStruct((grid, _SUBLANES, _LANES), jnp.float32),
        grid=(grid,),
        in_specs=[in_blk, in_blk],
        out_specs=pl.BlockSpec((None, _SUBLANES, _LANES), lambda i: (i, 0, 0)),
        compiler_params=cparams,
    )(pred2d, tgt2d)

    total = jnp.sum(partials)   # tiny cross-block/cross-lane reduce in XLA
    if reduction == "mean":
        return total / jnp.float32(n_elem)
    if reduction == "sum":
        return total
    raise ValueError(f"unsupported reduction: {reduction!r}")


# ----------------------------- reference -----------------------------------

def _focal_loss_ref_elem(pred, logit, gamma=1.5, alpha=0.25):
    x = pred.astype(jnp.float32)
    z = logit.astype(jnp.float32)
    bce = jnp.maximum(x, 0.0) - x * z + jnp.log1p(jnp.exp(-jnp.abs(x)))
    p = jax.nn.sigmoid(x)
    p_t = z * p + (1 - z) * (1 - p)
    return bce * (z * alpha + (1 - z) * (1 - alpha)) * (1.0 - p_t) ** gamma


def _focal_loss_ref(pred, logit, gamma=1.5, alpha=0.25):
    return _focal_loss_ref_elem(pred, logit, gamma, alpha).mean()


if __name__ == "__main__":
    key = jax.random.PRNGKey(0)
    k1, k2 = jax.random.split(key)

    # NCHW, small shapes: batch=2, channels=4, spatial=16x16
    pred = jax.random.normal(k1, (2, 4, 16, 16), dtype=jnp.float32)
    logit = (jax.random.uniform(k2, (2, 4, 16, 16)) > 0.5).astype(jnp.float32)

    out = jax.block_until_ready(
        focal_loss(pred, logit, gamma=1.5, alpha=0.25, reduction="mean"))
    ref = _focal_loss_ref(pred, logit)
    assert jnp.allclose(out, ref, rtol=2e-5, atol=1e-6), (out, ref)

    # Ragged size (not a multiple of 128) exercises the in-kernel mask path.
    p2 = jax.random.normal(k1, (2, 3, 7, 5), dtype=jnp.float32)
    t2 = (jax.random.uniform(k2, (2, 3, 7, 5)) > 0.5).astype(jnp.float32)
    out2 = jax.block_until_ready(focal_loss(p2, t2))
    ref2 = _focal_loss_ref(p2, t2)
    assert jnp.allclose(out2, ref2, rtol=2e-5, atol=1e-6), (out2, ref2)

    # reduction='none' path (elementwise map kernel).
    out3 = jax.block_until_ready(focal_loss(pred, logit, reduction="none"))
    ref3 = _focal_loss_ref_elem(pred, logit)
    assert out3.shape == pred.shape
    assert jnp.allclose(out3, ref3, rtol=2e-5, atol=1e-6)

    print("KERNEL_OK")
</pallas_src>

<mosaic_0001>
module attributes {stable_mosaic.version = 11 : i64} {
  func.func @_focal_sum_kernel(%arg0: i32, %arg1: memref<16x128xf32, #tpu.memory_space<vmem>>, %arg2: memref<16x128xf32, #tpu.memory_space<vmem>>, %arg3: memref<1x8x128xf32, #tpu.memory_space<vmem>>) attributes {dimension_semantics = [#tpu.dimension_semantics<parallel>], iteration_bounds = array<i64: 1>, scalar_prefetch = 0 : i64, scratch_operands = 0 : i64, tpu.core_type = #tpu.core_type<tc>, window_params = [{transform_indices = @transform_0, window_bounds = array<i64: 16, 128>}, {transform_indices = @transform_1, window_bounds = array<i64: 16, 128>}, {transform_indices = @transform_2, window_bounds = array<i64: 1, 8, 128>}]} {
    %c0 = arith.constant 0 : index
    %c0_0 = arith.constant 0 : index
    %0 = vector.load %arg1[%c0, %c0_0] : memref<16x128xf32, #tpu.memory_space<vmem>>, vector<16x128xf32>
    %c0_1 = arith.constant 0 : index
    %c0_2 = arith.constant 0 : index
    %1 = vector.load %arg2[%c0_1, %c0_2] : memref<16x128xf32, #tpu.memory_space<vmem>>, vector<16x128xf32>
    %2 = math.absf %0 : vector<16x128xf32>
    %cst = arith.constant 0.000000e+00 : f32
    %3 = vector.broadcast %cst : f32 to vector<16x128xf32>
    %4 = arith.subf %3, %2 : vector<16x128xf32>
    %5 = math.exp %4 : vector<16x128xf32>
    %cst_3 = arith.constant 1.000000e+00 : f32
    %6 = vector.broadcast %cst_3 : f32 to vector<16x128xf32>
    %7 = arith.addf %6, %5 : vector<16x128xf32>
    %cst_4 = arith.constant 1.000000e+00 : f32
    %8 = vector.broadcast %cst_4 : f32 to vector<16x128xf32>
    %9 = arith.divf %8, %7 : vector<16x128xf32>
    %cst_5 = arith.constant 0.000000e+00 : f32
    %10 = vector.broadcast %cst_5 : f32 to vector<16x128xf32>
    %11 = arith.maximumf %0, %10 : vector<16x128xf32>
    %12 = arith.mulf %0, %1 : vector<16x128xf32>
    %13 = arith.subf %11, %12 : vector<16x128xf32>
    %14 = math.log1p %5 : vector<16x128xf32>
    %15 = arith.addf %13, %14 : vector<16x128xf32>
    %cst_6 = arith.constant 0.000000e+00 : f32
    %16 = vector.broadcast %cst_6 : f32 to vector<16x128xf32>
    %17 = arith.cmpf oge, %0, %16 : vector<16x128xf32>
    %18 = arith.mulf %5, %9 : vector<16x128xf32>
    %19 = arith.select %17, %9, %18 : vector<16x128xi1>, vector<16x128xf32>
    %20 = arith.mulf %1, %19 : vector<16x128xf32>
    %cst_7 = arith.constant 1.000000e+00 : f32
    %21 = vector.broadcast %cst_7 : f32 to vector<16x128xf32>
    %22 = arith.subf %21, %1 : vector<16x128xf32>
    %cst_8 = arith.constant 1.000000e+00 : f32
    %23 = vector.broadcast %cst_8 : f32 to vector<16x128xf32>
    %24 = arith.subf %23, %19 : vector<16x128xf32>
    %25 = arith.mulf %22, %24 : vector<16x128xf32>
    %26 = arith.addf %20, %25 : vector<16x128xf32>
    %cst_9 = arith.constant 2.500000e-01 : f32
    %27 = vector.broadcast %cst_9 : f32 to vector<16x128xf32>
    %28 = arith.mulf %1, %27 : vector<16x128xf32>
    %cst_10 = arith.constant 1.000000e+00 : f32
    %29 = vector.broadcast %cst_10 : f32 to vector<16x128xf32>
    %30 = arith.subf %29, %1 : vector<16x128xf32>
    %cst_11 = arith.constant 7.500000e-01 : f32
    %31 = vector.broadcast %cst_11 : f32 to vector<16x128xf32>
    %32 = arith.mulf %30, %31 : vector<16x128xf32>
    %33 = arith.addf %28, %32 : vector<16x128xf32>
    %cst_12 = arith.constant 1.000000e+00 : f32
    %34 = vector.broadcast %cst_12 : f32 to vector<16x128xf32>
    %35 = arith.subf %34, %26 : vector<16x128xf32>
    %36 = math.sqrt %35 : vector<16x128xf32>
    %37 = arith.mulf %35, %36 : vector<16x128xf32>
    %38 = arith.mulf %15, %33 : vector<16x128xf32>
    %39 = arith.mulf %38, %37 : vector<16x128xf32>
    %40 = vector.shape_cast %39 : vector<16x128xf32> to vector<2x8x128xf32>
    %cst_13 = arith.constant dense<0.000000e+00> : vector<8x128xf32>
    %41 = vector.multi_reduction <add>, %40, %cst_13 [0] : vector<2x8x128xf32> to vector<8x128xf32>
    %c0_14 = arith.constant 0 : index
    %c0_15 = arith.constant 0 : index
    %c0_16 = arith.constant 0 : index
    %42 = vector.load %arg3[%c0_14, %c0_15, %c0_16] : memref<1x8x128xf32, #tpu.memory_space<vmem>>, vector<1x8x128xf32>
    %43 = vector.shape_cast %42 : vector<1x8x128xf32> to vector<8x128xf32>
    %44 = vector.shape_cast %41 : vector<8x128xf32> to vector<1x8x128xf32>
    tpu.vector_store %arg3[%c0_14, %c0_15, %c0_16], %44 {strides = array<i32>} : memref<1x8x128xf32, #tpu.memory_space<vmem>>, vector<1x8x128xf32>,
    return
  }
  func.func @transform_0(%arg0: i32) -> (i32, i32) {
    %c0_i32 = arith.constant 0 : i32
    %c0_i32_0 = arith.constant 0 : i32
    return %arg0, %c0_i32 : i32, i32
  }
  func.func @transform_1(%arg0: i32) -> (i32, i32) {
    %c0_i32 = arith.constant 0 : i32
    %c0_i32_0 = arith.constant 0 : i32
    return %arg0, %c0_i32 : i32, i32
  }
  func.func @transform_2(%arg0: i32) -> (i32, i32, i32) {
    %c0_i32 = arith.constant 0 : i32
    %c0_i32_0 = arith.constant 0 : i32
    %c0_i32_1 = arith.constant 0 : i32
    return %arg0, %c0_i32, %c0_i32_0 : i32, i32, i32
  }
}

</mosaic_0001>

<bundles_post_ra>
// kernel: tpu_custom_call.1
= control target key start
LH: loop header
LB: loop body
LE: loop exit
PB: predicated region body
PF: predicated region fallthrough
CT: control target
= control target key end

     0   :  { %7 = vsyncpa [#allocation3], 0  ;;  %s301_s0 = inlined_call_operand.hbm [shape: f32[16,128], index: 0, kind: input, shape index: {}]   ;;  %s302_s1 = inlined_call_operand.hbm [shape: f32[16,128], index: 1, kind: input, shape index: {}]   ;;  %s303_s2 = inlined_call_operand.hbm [shape: f32[1,8,128], index: 2, kind: output, shape index: {}]  }
   0x1   :  { %8 = vsyncpa [#allocation6], 0 }
   0x2   :  { %9 = vsyncpa [#allocation4], 0  ;;  %s239_s9 = smov [#allocation2]   ;;  %s167_s13 = scalar_lea.hbm %s301_s0, 256 }
   0x3   :  { %s15_s10 = sshll.u32 %s239_s9, 4  ;;  %p168_p0 = scmp.ne.s32.totalorder %s301_s0, %s167_s13  ;;  %s16_s10 = int_to_ptr.vmem [resolvable:$true] %s15_s10 }
   0x4   :  { %p171_p1 = scmp.lt.u32.totalorder %s167_s13, %s301_s0 }
   0x6   :  { %p173_p2 = pnand %p171_p1, %p168_p0 }
   0x8   :  { %176 = shalt.err (!%p173_p2)
}
   0x9   :  { %s177_s18 = scalar_lea.vmem %s16_s10, 256  ;;  %p182_p4 = scmp.lt.s32.totalorder %s16_s10, %s16_s10 }
   0xa   :  { %p178_p3 = scmp.ne.s32.totalorder %s16_s10, %s177_s18  ;;  %p183_p5 = scmp.lt.s32.totalorder %s177_s18, %s177_s18 }
   0xc   :  { %p184_p6 = por %p183_p5, %p182_p4 }
   0xe   :  { %p185_p7 = pnand %p184_p6, %p178_p3 }
  0x10   :  { %188 = shalt.err (!%p185_p7)
}
  0x11   :  { %s240_s19 = smov 128   ;;  %s241_s20 = smov 8  }
  0x12   :  { %21 = dma.hbm_to_vmem [thread:$0]  %s301_s0, 256, %s16_s10, [#allocation3], %s240_s19, %s240_s19, %s241_s20  }
  0x13   :  { %s242_s23 = smov [#allocation5]   ;;  %s189_s27 = scalar_lea.hbm %s302_s1, 256 }
  0x14   :  { %s27_s24 = sshll.u32 %s242_s23, 4  ;;  %p190_p8 = scmp.ne.s32.totalorder %s302_s1, %s189_s27  ;;  %s28_s24 = int_to_ptr.vmem [resolvable:$true] %s27_s24 }
  0x15   :  { %p193_p9 = scmp.lt.u32.totalorder %s189_s27, %s302_s1 }
  0x17   :  { %p195_p10 = pnand %p193_p9, %p190_p8 }
  0x19   :  { %198 = shalt.err (!%p195_p10)
}
  0x1a   :  { %s199_s4 = scalar_lea.vmem %s28_s24, 256  ;;  %p204_p12 = scmp.lt.s32.totalorder %s28_s24, %s28_s24 }
  0x1b   :  { %p200_p11 = scmp.ne.s32.totalorder %s28_s24, %s199_s4  ;;  %p205_p13 = scmp.lt.s32.totalorder %s199_s4, %s199_s4 }
  0x1d   :  { %p206_p0 = por %p205_p13, %p204_p12 }
  0x1f   :  { %p207_p1 = pnand %p206_p0, %p200_p11 }
  0x21   :  { %210 = shalt.err (!%p207_p1)
}
  0x22   :  { %33 = dma.hbm_to_vmem [thread:$0]  %s302_s1, 256, %s28_s24, [#allocation6], %s240_s19, %s240_s19, %s241_s20  }
  0x23   :  { %233 = dma.done.wait [#allocation3], 256  }
  0x24   :  { %234 = vsyncadd [#allocation3], 4294967040 }
  0x25   :  { %235 = dma.done.wait [#allocation6], 256  }
  0x26   :  { %236 = vsyncadd [#allocation6], 4294967040  ;;  %v40_v0 = vld [vmem:[#allocation2] sm:$0xff]  ;;  %v283_v1 = vld [vmem:[#allocation2 + $0x8] sm:$0xff]  ;;  %s243_s1 = smov [#allocation7]  }
  0x27   :  { %v44_v2 = vand.u32 2147483647, %v40_v0  ;;  %v45_v3 = vand.u32 2147483647, %v283_v1  ;;  %v42_v12 = vld [vmem:[#allocation5] sm:$0xff]  ;;  %v43_v14 = vld [vmem:[#allocation5 + $0x8] sm:$0xff] }
  0x28   :  { %vm84_vm0 = vcmp.ge.f32.partialorder %v40_v0, 0.0  ;;  %vm85_vm1 = vcmp.ge.f32.partialorder %v283_v1, 0.0  ;;  %v92_v18 = vsub.f32 1.0, %v42_v12  ;;  %v93_v20 = vsub.f32 1.0, %v43_v14  ;;  %s136_s6 = sshll.u32 %s243_s1, 4  ;;  %s137_s6 = int_to_ptr.vmem [resolvable:$true] %s136_s6 }
  0x29   :  { %v46_v4 = vsub.f32 0.0, %v44_v2  ;;  %v47_v5 = vsub.f32 0.0, %v45_v3  ;;  %v58_v40 = vmax.f32 %v40_v0, 0.0  ;;  %v60_v41 = vmul.f32 %v42_v12, %v40_v0  ;;  %s211_s7 = scalar_lea.vmem %s137_s6, 128  ;;  %p216_p3 = scmp.lt.s32.totalorder %s137_s6, %s137_s6 }
  0x2a   :  { %v59_v42 = vmax.f32 %v283_v1, 0.0  ;;  %v61_v43 = vmul.f32 %v43_v14, %v283_v1  ;;  %v100_v49 = vmul.f32 0.25, %v42_v12  ;;  %v102_v50 = vmul.f32 0.75, %v92_v18  ;;  %p212_p2 = scmp.ne.s32.totalorder %s137_s6, %s211_s7  ;;  %p217_p4 = scmp.lt.s32.totalorder %s211_s7, %s211_s7 }
  0x2b   :  { %v48_v6 = vmul.f32 1.442695, %v46_v4  ;;  %v50_v7 = vmul.f32 1.442695, %v47_v5  ;;  %v62_v48 = vsub.f32 %v58_v40, %v60_v41  ;;  %v101_v53 = vmul.f32 0.25, %v43_v14 }
  0x2c   :  { %v63_v51 = vsub.f32 %v59_v42, %v61_v43  ;;  %v103_v54 = vmul.f32 0.75, %v93_v20  ;;  %v104_v57 = vadd.f32 %v102_v50, %v100_v49  ;;  %p218_p5 = por %p217_p4, %p216_p3 }
  0x2d   :  { %151 = vpow2.f32 %v48_v6 }
  0x2e   :  { %153 = vpow2.f32 %v50_v7  ;;  %v105_v60 = vadd.f32 %v103_v54, %v101_v53  ;;  %p219_p6 = pnand %p218_p5, %p212_p2 }
  0x37   :  { %v152_v8 = vpop.eup %151 }
  0x38   :  { %v154_v9 = vpop.eup %153  ;;  %v52_v10 = vadd.f32 1.0, %v152_v8  ;;  %v67_v26 = vmul.f32 -0.5, %v152_v8  ;;  %v70_v35 = vand.u32 2147483647, %v152_v8 }
  0x39   :  { %v53_v11 = vadd.f32 1.0, %v154_v9  ;;  %v76_v28 = vmul.f32 -0.5, %v154_v9  ;;  %v79_v39 = vand.u32 2147483647, %v154_v9 }
  0x3a   :  { %155 = vrcp.f32 %v52_v10  ;;  %v68_v32 = vadd.f32 1.0, %v67_v26  ;;  %vm71_vm2 = vcmp.lt.f32.partialorder %v70_v35, 0.0004427343 }
  0x3b   :  { %157 = vrcp.f32 %v53_v11  ;;  %v77_v36 = vadd.f32 1.0, %v76_v28  ;;  %vm80_vm3 = vcmp.lt.f32.partialorder %v79_v39, 0.0004427343 }
  0x3c   :  { %159 = vlog2.f32 %v52_v10  ;;  %v69_v45 = vmul.f32 %v152_v8, %v68_v32 }
  0x3d   :  { %161 = vlog2.f32 %v53_v11  ;;  %v78_v47 = vmul.f32 %v154_v9, %v77_v36 }
  0x44   :  { %v156_v13 = vpop.eup %155 }
  0x45   :  { %v158_v15 = vpop.eup %157  ;;  %v86_v16 = vmul.f32 %v156_v13, %v152_v8 }
  0x46   :  { %v87_v17 = vmul.f32 %v158_v15, %v154_v9  ;;  %v160_v34 = vpop.eup %159 }
  0x47   :  { %v88_v19 = vsel %vm84_vm0, %v156_v13, %v86_v16  ;;  %v162_v38 = vpop.eup %161  ;;  %v66_v44 = vmul.f32 0.6931472, %v160_v34 }
  0x48   :  { %v89_v21 = vsel %vm85_vm1, %v158_v15, %v87_v17  ;;  %v90_v22 = vmul.f32 %v88_v19, %v42_v12  ;;  %v94_v23 = vsub.f32 1.0, %v88_v19  ;;  %v75_v46 = vmul.f32 0.6931472, %v162_v38 }
  0x49   :  { %v91_v24 = vmul.f32 %v89_v21, %v43_v14  ;;  %v95_v25 = vsub.f32 1.0, %v89_v21  ;;  %v72_v52 = vsel %vm71_vm2, %v69_v45, %v66_v44 }
  0x4a   :  { %v96_v27 = vmul.f32 %v94_v23, %v92_v18  ;;  %v81_v55 = vsel %vm80_vm3, %v78_v47, %v75_v46  ;;  %v82_v56 = vadd.f32 %v72_v52, %v62_v48 }
  0x4b   :  { %v97_v29 = vmul.f32 %v95_v25, %v93_v20  ;;  %v83_v59 = vadd.f32 %v81_v55, %v63_v51 }
  0x4c   :  { %v98_v30 = vadd.f32 %v96_v27, %v90_v22  ;;  %v124_v3 = vmul.f32 %v104_v57, %v82_v56 }
  0x4d   :  { %v99_v31 = vadd.f32 %v97_v29, %v91_v24  ;;  %v125_v6 = vmul.f32 %v105_v60, %v83_v59 }
  0x4e   :  { %v106_v33 = vsub.f32 1.0, %v98_v30 }
  0x4f   :  { %v107_v37 = vsub.f32 1.0, %v99_v31 }
  0x50   :  { %163 = vrsqrt.f32 %v106_v33  ;;  %vm110_vm4 = vcmp.eq.f32.partialorder %v106_v33, inf  ;;  %v113_v61 = vand.u32 2147483648, %v106_v33  ;;  %vm112_vm5 = vcmp.eq.f32.partialorder %v106_v33, 0.0 }
  0x51   :  { %165 = vrsqrt.f32 %v107_v37  ;;  %vm117_vm6 = vcmp.eq.f32.partialorder %v107_v37, inf  ;;  %v120_v0 = vand.u32 2147483648, %v107_v37  ;;  %vm119_vm7 = vcmp.eq.f32.partialorder %v107_v37, 0.0 }
  0x5a   :  { %v164_v58 = vpop.eup %163 }
  0x5b   :  { %v166_v62 = vpop.eup %165  ;;  %v109_v63 = vmul.f32 %v164_v58, %v106_v33 }
  0x5c   :  { %v116_v1 = vmul.f32 %v166_v62, %v107_v37 }
  0x5d   :  { %v111_v2 = vsel %vm110_vm4, %v106_v33, %v109_v63 }
  0x5e   :  { %v114_v4 = vsel %vm112_vm5, %v113_v61, %v111_v2  ;;  %v118_v5 = vsel %vm117_vm6, %v107_v37, %v116_v1 }
  0x5f   :  { %v121_v7 = vsel %vm119_vm7, %v120_v0, %v118_v5  ;;  %v122_v8 = vmul.f32 %v114_v4, %v106_v33 }
  0x60   :  { %v123_v9 = vmul.f32 %v121_v7, %v107_v37 }
  0x61   :  { %v126_v10 = vmul.f32 %v124_v3, %v122_v8 }
  0x62   :  { %v127_v11 = vmul.f32 %v125_v6, %v123_v9 }
  0x64   :  { %v128_v12 = vadd.f32 %v127_v11, %v126_v10 }
  0x66   :  { %129 = vst [vmem:[#allocation7] sm:$0xff] %v128_v12 }
  0x67   :  { %222 = shalt.err (!%p219_p6)
}
  0x68   :  { %s223_s10 = scalar_lea.hbm %s303_s2, 128 }
  0x69   :  { %p224_p7 = scmp.ne.s32.totalorder %s303_s2, %s223_s10  ;;  %p227_p8 = scmp.lt.u32.totalorder %s223_s10, %s303_s2 }
  0x6b   :  { %p229_p9 = pnand %p227_p8, %p224_p7 }
  0x6d   :  { %232 = shalt.err (!%p229_p9)
}
  0x6e   :  { %139 = dma.vmem_to_hbm [thread:$0]  %s137_s6, 128, %s303_s2, [#allocation4]  }
  0x6f   :  { %237 = dma.done.wait [#allocation4], 128  }
  0x70   :  { %238 = vsyncadd [#allocation4], 4294967168 }
  0x71   :  { %143 = vsyncpa [#allocation3], 1 }
  0x72   :  { %144 = vsyncpa [#allocation6], 1 }
  0x73   :  { %145 = vsyncpa [#allocation4], 1 }

</bundles_post_ra>
